<compile_context>
chip_gen: v7x
topology: tpu7x:2x2x1
jax: 0.10.0
libtpu: 0.0.40
codegen_flags: <defaults>
</compile_context>

<pallas_src>
import functools

import jax
import jax.numpy as jnp
from jax import lax
from jax.experimental import pallas as pl
from jax.experimental.pallas import tpu as pltpu

GAMMA = 2.0
EPS = 1e-07

# Leading "parallel" grid axis: shards tiles across v7x's 2 TensorCores,
# degrades to a plain sequential loop on v5e/v6e (1 TC).
NUM_CORE_SPLITS = 2


def _focal_loss_kernel(inp_ref, tgt_ref, out_ref, *, n_rows, tile_rows,
                       tiles_per_core):
    core = pl.program_id(0)   # "parallel" axis (megacore shard)
    step = pl.program_id(1)   # "arbitrary" reduction axis (batch tiles)

    # Per-core partial sum lives in the resident output block.
    @pl.when(step == 0)
    def _():
        out_ref[...] = jnp.zeros_like(out_ref)

    x = inp_ref[...]          # (TN, C), native dtype
    tgt = tgt_ref[...]        # (TN, 1) int32
    tn, c = x.shape

    # One-hot select of the target-class probability p_t per row.  The sum over
    # the class axis picks exactly one element, so it is exact in any dtype.
    col_ids = lax.broadcasted_iota(jnp.int32, (tn, c), 1)
    onehot = col_ids == tgt                                    # (TN, C) bool
    p = jnp.sum(jnp.where(onehot, x, jnp.zeros_like(x)),
                axis=1, keepdims=True).astype(jnp.float32)     # (TN, 1) f32

    # Focal loss on the selected probability only: one log/clamp/square per row.
    pc = jnp.clip(p, EPS, 1.0 - EPS)
    one_minus = 1.0 - pc
    row_loss = -jnp.log(pc) * one_minus * one_minus            # (TN, 1)

    # Mask rows that are grid padding (beyond N) and rows whose label hits no
    # class (out-of-range label == all-zero one-hot row in the reference).
    tile_idx = core * tiles_per_core + step
    row_ids = tile_idx * tile_rows + lax.broadcasted_iota(jnp.int32, (tn, 1), 0)
    in_range = (tgt >= 0) & (tgt < c)
    valid = (row_ids < n_rows) & in_range
    row_loss = jnp.where(valid, row_loss, jnp.zeros_like(row_loss))

    # Accumulate this tile's contribution into the resident per-core output
    # (scalar broadcast-added across the lane-dense (8, 128) block).
    out_ref[...] = out_ref[...] + jnp.sum(row_loss)


def focal_loss(inp, target):
    """inp: (N, C) probabilities (any float dtype); target: (N,) int labels."""
    n, c = inp.shape
    tgt2d = target.astype(jnp.int32).reshape(n, 1)

    # Pick TN so a double-buffered (TN, C) tile stays well under scoped VMEM on
    # every TPU generation (~6 MiB per buffer -> ~12 MiB pipelined).
    bytes_per_row = c * inp.dtype.itemsize
    tn = min(1024, max(8, (6 * 1024 * 1024) // max(1, bytes_per_row)))
    tn = max(8, (tn // 8) * 8)
    tn = min(tn, max(8, ((n + 7) // 8) * 8))   # don't exceed what N needs

    num_tiles = pl.cdiv(n, tn)
    tiles_per_core = pl.cdiv(num_tiles, NUM_CORE_SPLITS)

    def row_map(core, step):
        # Clamp so phantom tiles (beyond the array) re-read the last real tile;
        # their rows are masked to zero inside the kernel.
        t = jnp.minimum(core * tiles_per_core + step, num_tiles - 1)
        return (t, 0)

    kernel = functools.partial(
        _focal_loss_kernel, n_rows=n, tile_rows=tn, tiles_per_core=tiles_per_core)

    # TODO(synk): for very small C (<128) a rows->lanes fold (reshape to
    # (N/k, k*C)) would make the tiles lane-dense; skipped for simplicity.
    partials = pl.pallas_call(
        kernel,
        out_shape=jax.ShapeDtypeStruct((NUM_CORE_SPLITS * 8, 128), jnp.float32),
        grid=(NUM_CORE_SPLITS, tiles_per_core),
        in_specs=[
            pl.BlockSpec((tn, c), row_map),   # (TN, C) data tile
            pl.BlockSpec((tn, 1), row_map),   # (TN, 1) labels ride same pipeline
        ],
        out_specs=pl.BlockSpec((8, 128), lambda core, step: (core, 0)),
        compiler_params=pltpu.CompilerParams(
            dimension_semantics=("parallel", "arbitrary"),
            vmem_limit_bytes=32 * 1024 * 1024,
        ),
    )(inp, tgt2d)

    # Each core's (8, 128) block holds its partial sum replicated everywhere.
    total = partials[0::8, 0].sum()
    return total / jnp.float32(n)


def focal_loss_ref(inp, target):
    """Pure-JAX reference mirroring the PyTorch module."""
    n, c = inp.shape
    y = jnp.eye(c, dtype=jnp.float32)[target]
    xc = jnp.clip(inp.astype(jnp.float32), EPS, 1.0 - EPS)
    loss = -y * jnp.log(xc) * (1.0 - xc) ** GAMMA
    return loss.sum(axis=1).mean()


if __name__ == "__main__":
    key = jax.random.PRNGKey(0)
    k_inp, k_tgt = jax.random.split(key)

    N, C = 8, 16
    # Probability-like inputs (the module clamps them to (eps, 1-eps)).
    logits = jax.random.normal(k_inp, (N, C), dtype=jnp.float32)
    inp = jax.nn.softmax(logits, axis=-1)
    target = jax.random.randint(k_tgt, (N,), 0, C, dtype=jnp.int32)

    out = focal_loss(inp, target)
    out = jax.block_until_ready(out)

    ref = focal_loss_ref(inp, target)
    assert jnp.allclose(out, ref, rtol=1e-5, atol=1e-6), (out, ref)

    # Also exercise a shape that needs multiple tiles / padding.
    N2, C2 = 1000, 40
    logits2 = jax.random.normal(k_inp, (N2, C2), dtype=jnp.float32)
    inp2 = jax.nn.softmax(logits2, axis=-1)
    target2 = jax.random.randint(k_tgt, (N2,), 0, C2, dtype=jnp.int32)
    out2 = jax.block_until_ready(focal_loss(inp2, target2))
    ref2 = focal_loss_ref(inp2, target2)
    assert jnp.allclose(out2, ref2, rtol=1e-5, atol=1e-6), (out2, ref2)

    print("KERNEL_OK")
</pallas_src>

<mosaic_0001>
module attributes {stable_mosaic.version = 11 : i64} {
  func.func @_focal_loss_kernel(%arg0: i32, %arg1: i32, %arg2: memref<8x16xf32, #tpu.memory_space<vmem>>, %arg3: memref<8x1xi32, #tpu.memory_space<vmem>>, %arg4: memref<8x128xf32, #tpu.memory_space<vmem>>) attributes {dimension_semantics = [#tpu.dimension_semantics<parallel>, #tpu.dimension_semantics<arbitrary>], iteration_bounds = array<i64: 2, 1>, scalar_prefetch = 0 : i64, scratch_operands = 0 : i64, tpu.core_type = #tpu.core_type<tc>, window_params = [{transform_indices = @transform_0, window_bounds = array<i64: 8, 16>}, {transform_indices = @transform_1, window_bounds = array<i64: 8, 1>}, {transform_indices = @transform_2, window_bounds = array<i64: 8, 128>}]} {
    %c0_i32 = arith.constant 0 : i32
    %0 = arith.cmpi eq, %arg1, %c0_i32 : i32
    %1 = arith.extui %0 : i1 to i32
    %c0_i32_0 = arith.constant 0 : i32
    %2 = arith.cmpi ne, %1, %c0_i32_0 : i32
    scf.if %2 {
      %cst_17 = arith.constant 0.000000e+00 : f32
      %47 = vector.broadcast %cst_17 : f32 to vector<8x128xf32>
      %c0_18 = arith.constant 0 : index
      %c0_19 = arith.constant 0 : index
      %48 = vector.load %arg4[%c0_18, %c0_19] : memref<8x128xf32, #tpu.memory_space<vmem>>, vector<8x128xf32>
      tpu.vector_store %arg4[%c0_18, %c0_19], %47 {strides = array<i32>} : memref<8x128xf32, #tpu.memory_space<vmem>>, vector<8x128xf32>,
    } else {
    }
    %c0 = arith.constant 0 : index
    %c0_1 = arith.constant 0 : index
    %3 = vector.load %arg2[%c0, %c0_1] : memref<8x16xf32, #tpu.memory_space<vmem>>, vector<8x16xf32>
    %c0_2 = arith.constant 0 : index
    %c0_3 = arith.constant 0 : index
    %4 = vector.load %arg3[%c0_2, %c0_3] : memref<8x1xi32, #tpu.memory_space<vmem>>, vector<8x1xi32>
    %5 = tpu.iota {dimensions = array<i32: 1>} : vector<8x16xi32>
    %6 = vector.broadcast %4 : vector<8x1xi32> to vector<8x16xi32>
    %7 = arith.cmpi eq, %5, %6 : vector<8x16xi32>
    %cst = arith.constant 0.000000e+00 : f32
    %8 = vector.broadcast %cst : f32 to vector<8x16xf32>
    %9 = arith.select %7, %3, %8 : vector<8x16xi1>, vector<8x16xf32>
    %cst_4 = arith.constant dense<0.000000e+00> : vector<8xf32>
    %10 = vector.multi_reduction <add>, %9, %cst_4 [1] : vector<8x16xf32> to vector<8xf32>
    %11 = vector.shape_cast %10 : vector<8xf32> to vector<8x1xf32>
    %cst_5 = arith.constant 1.000000e-07 : f32
    %cst_6 = arith.constant 0.99999988 : f32
    %12 = vector.broadcast %cst_5 : f32 to vector<8x1xf32>
    %13 = arith.maximumf %12, %11 : vector<8x1xf32>
    %14 = vector.broadcast %cst_6 : f32 to vector<8x1xf32>
    %15 = arith.minimumf %14, %13 : vector<8x1xf32>
    %cst_7 = arith.constant 1.000000e+00 : f32
    %16 = vector.broadcast %cst_7 : f32 to vector<8x1xf32>
    %17 = arith.subf %16, %15 : vector<8x1xf32>
    %18 = math.log %15 : vector<8x1xf32>
    %cst_8 = arith.constant 0.000000e+00 : f32
    %19 = vector.broadcast %cst_8 : f32 to vector<8x1xf32>
    %20 = arith.subf %19, %18 : vector<8x1xf32>
    %21 = arith.mulf %20, %17 : vector<8x1xf32>
    %22 = arith.mulf %21, %17 : vector<8x1xf32>
    %c1_i32 = arith.constant 1 : i32
    %23 = arith.muli %arg0, %c1_i32 : i32
    %24 = arith.addi %23, %arg1 : i32
    %c8_i32 = arith.constant 8 : i32
    %25 = arith.muli %24, %c8_i32 : i32
    %26 = tpu.iota {dimensions = array<i32: 0>} : vector<8x1xi32>
    %27 = vector.broadcast %25 : i32 to vector<8x1xi32>
    %28 = arith.addi %27, %26 : vector<8x1xi32>
    %c0_i32_9 = arith.constant 0 : i32
    %29 = vector.broadcast %c0_i32_9 : i32 to vector<8x1xi32>
    %30 = arith.cmpi sge, %4, %29 : vector<8x1xi32>
    %c16_i32 = arith.constant 16 : i32
    %31 = vector.broadcast %c16_i32 : i32 to vector<8x1xi32>
    %32 = arith.cmpi slt, %4, %31 : vector<8x1xi32>
    %33 = arith.andi %30, %32 : vector<8x1xi1>
    %c8_i32_10 = arith.constant 8 : i32
    %34 = vector.broadcast %c8_i32_10 : i32 to vector<8x1xi32>
    %35 = arith.cmpi slt, %28, %34 : vector<8x1xi32>
    %36 = arith.andi %35, %33 : vector<8x1xi1>
    %cst_11 = arith.constant 0.000000e+00 : f32
    %37 = vector.broadcast %cst_11 : f32 to vector<8x1xf32>
    %38 = arith.select %36, %22, %37 : vector<8x1xi1>, vector<8x1xf32>
    %c0_12 = arith.constant 0 : index
    %c0_13 = arith.constant 0 : index
    %39 = vector.load %arg4[%c0_12, %c0_13] : memref<8x128xf32, #tpu.memory_space<vmem>>, vector<8x128xf32>
    %40 = vector.shape_cast %38 : vector<8x1xf32> to vector<1x8x1xf32>
    %cst_14 = arith.constant dense<0.000000e+00> : vector<1xf32>
    %41 = vector.multi_reduction <add>, %40, %cst_14 [1, 2] : vector<1x8x1xf32> to vector<1xf32>
    %42 = vector.shape_cast %41 : vector<1xf32> to vector<1x1x1xf32>
    %43 = vector.extract %42[0, 0, 0] : f32 from vector<1x1x1xf32>
    %44 = vector.broadcast %43 : f32 to vector<8x128xf32>
    %45 = arith.addf %39, %44 : vector<8x128xf32>
    %c0_15 = arith.constant 0 : index
    %c0_16 = arith.constant 0 : index
    %46 = vector.load %arg4[%c0_15, %c0_16] : memref<8x128xf32, #tpu.memory_space<vmem>>, vector<8x128xf32>
    tpu.vector_store %arg4[%c0_15, %c0_16], %45 {strides = array<i32>} : memref<8x128xf32, #tpu.memory_space<vmem>>, vector<8x128xf32>,
    return
  }
  func.func @transform_0(%arg0: i32, %arg1: i32) -> (i32, i32) {
    %c1_i32 = arith.constant 1 : i32
    %0 = arith.muli %arg0, %c1_i32 : i32
    %1 = arith.addi %0, %arg1 : i32
    %c0_i32 = arith.constant 0 : i32
    %2 = arith.minsi %1, %c0_i32 : i32
    %c0_i32_0 = arith.constant 0 : i32
    %c0_i32_1 = arith.constant 0 : i32
    return %2, %c0_i32_0 : i32, i32
  }
  func.func @transform_1(%arg0: i32, %arg1: i32) -> (i32, i32) {
    %c1_i32 = arith.constant 1 : i32
    %0 = arith.muli %arg0, %c1_i32 : i32
    %1 = arith.addi %0, %arg1 : i32
    %c0_i32 = arith.constant 0 : i32
    %2 = arith.minsi %1, %c0_i32 : i32
    %c0_i32_0 = arith.constant 0 : i32
    %c0_i32_1 = arith.constant 0 : i32
    return %2, %c0_i32_0 : i32, i32
  }
  func.func @transform_2(%arg0: i32, %arg1: i32) -> (i32, i32) {
    %c0_i32 = arith.constant 0 : i32
    %c0_i32_0 = arith.constant 0 : i32
    return %arg0, %c0_i32 : i32, i32
  }
}

</mosaic_0001>

<bundles_post_ra>
// kernel: tpu_custom_call.1
= control target key start
LH: loop header
LB: loop body
LE: loop exit
PB: predicated region body
PF: predicated region fallthrough
CT: control target
= control target key end

     0   :  { %7 = vsyncpa [#allocation3], 0  ;;  %s650_s0 = inlined_call_operand.vmem [shape: f32[8,16], index: 0, kind: input, shape index: {}]   ;;  %s651_s1 = inlined_call_operand.vmem [shape: s32[8,1], index: 1, kind: input, shape index: {}]   ;;  %s652_s2 = inlined_call_operand.hbm [shape: f32[16,128], index: 2, kind: output, shape index: {}]  }
   0x1   :  { %9 = vsyncpa [#allocation3 + $0x1], 0  ;;  %s534_s9 = smov 0   ;;  %s536_s10 = smov 0  }
   0x2   :  { %s538_s11 = smov 0   ;;  %s540_s12 = smov 0  }
   0x3   :  { %s542_s13 = smov 0   ;;  %s544_s14 = smov 0  }
   0x4 LB: > { %s356_s15 = sadd.s32 4294967295, %s515_s14   ;;  %s357_s16 = sadd.s32 4294967294, %s515_s14   ;;  %s515_s14 = sphi %s544_s14, %s15_s14   ;;  %s511_s13 = sphi %s542_s13, %s659_s13   ;;  %s507_s12 = sphi %s540_s12, %s658_s12   ;;  %s503_s11 = sphi %s538_s11, %s657_s11   ;;  %s499_s10 = sphi %s536_s10, %s656_s10   ;;  %s495_s9 = sphi %s534_s9, %s655_s9  }
   0x5   : > { %s27_s17 = sadd.s32 1, %s511_s13  ;;  %s98_s18 = sadd.s32 1, %s503_s11 }
   0x6   : > { %p29_p0 = scmp.ge.s32.totalorder %s27_s17, 2  ;;  %p108_p1 = scmp.ne.s32.totalorder %s503_s11, %s499_s10 }
   0x7   : > { %p109_p2 = scmp.eq.s32.totalorder %s356_s15, 1  ;;  %p114_p3 = scmp.ne.s32.totalorder %s499_s10, %s495_s9 }
   0x8   : > { %s661_s17 = smov (%p29_p0, %s27_s17), 0  ;;  %p115_p5 = scmp.eq.s32.totalorder %s357_s16, 1 }
   0x9   : > { %p574_p4 = por %p109_p2, %p108_p1  ;;  %s95_s20 = ssub.s32 %s511_s13, %s661_s17 }
   0xa   : > { %p360_p6 = scmp.ge.s32.totalorder %s515_s14, 1  ;;  %p96_p7 = scmp.eq.s32.totalorder %s95_s20, 0 }
   0xb   : > { %p581_p8 = por %p115_p5, %p114_p3  ;;  %p159_p9 = scmp.lt.s32.totalorder %s515_s14, 3 }
   0xc   : > { %s587_s22 = scalar_select %p96_p7, %s503_s11, %s98_s18  }
   0xd   : > { %p160_p10 = pnand %p360_p6, %p159_p9 }
   0xe   : > { %p191_p11 = scmp.lt.s32.totalorder (!%p160_p10), %s507_s12, 0  ;;  %v517_v0 = vmov (!%p160_p10), 0   ;;  %v217_v2 = vlaneseq (!%p160_p10)  ;;  %vm224_vm0 = vcmask (!%p160_p10), 130048   ;;  %s370_s3 = sshll.u32 (!%p160_p10), %s507_s12, 3  ;;  %vm249_vm7 = vcmask (!%p160_p10), 7168  }
   0xf   : > { %163 = sbr.rel (%p160_p10) target bundleno = 545 (0x221), region = 28  ;;  %434 = vset.pattern.permute.xlu0 (!%p160_p10), %v517_v0  ;;  %v240_v12 = vstv (!%p160_p10), %s370_s3  ;;  %s187_s4 = sand.u32 (!%p160_p10), 1, %s499_s10  }
  0x10   : > { %v218_v3 = vand.u32 (!%p160_p10), 127, %v217_v2  ;;  %v239_v11 = vshrl.u32 (!%p160_p10), %v217_v2, 7  ;;  %s361_s5 = sshll.u32 (!%p160_p10), %s187_s4, 3  ;;  %s372_s6 = sshll.u32 (!%p160_p10), %s507_s12, 7 }
  0x11   : > { %s189_s7 = scalar_lea.vmem (!%p160_p10), [#allocation2], %s361_s5  ;;  %s603_s20 = scalar_lea.hbm (!%p160_p10), %s652_s2, %s372_s6 }
  0x12   : > { %v241_v13 = vadd.s32 (!%p160_p10), %v240_v12, %v239_v11  ;;  %s277_s8 = sshll.u32 (!%p160_p10), %s189_s7, 4  ;;  %s605_s8 = int_to_ptr.vmem [resolvable:$true] %s277_s8 }
  0x14   : > { %vm245_vm5 = vcmp.lt.s32.totalorder (!%p160_p10), %v241_v13, 8 }
  0x16   : > { %s192_s23 = scalar_select %p191_p11, %s507_s12, 0 }
  0x17   : > { %s518_s12 = smov [#allocation2]  }
  0x18   : > { %s663_s23 = smov (!%p191_p11, %s192_s23), 0  ;;  %s441_s25 = sshll.u32 %s518_s12, 4  ;;  %s442_s25 = int_to_ptr.vmem [resolvable:$false] %s441_s25 }
  0x19   : > { %s365_s24 = sshll.u32 %s663_s23, 3  ;;  %s264_s23 = scalar_lea.sflag [#allocation3], %s187_s4 }
  0x1a   : > { %s206_s27 = scalar_lea.vmem %s651_s1, %s365_s24  ;;  %s196_s30 = scalar_lea.vmem %s650_s0, %s365_s24 }
  0x1b   : > { %v216_v1 = vld [vmem:[%s206_s27] sm:$0xff]  ;;  %s437_s24 = scalar_lea.vmem %s605_s8, 128  ;;  %s443_s26 = scalar_lea.vmem %s442_s25, 256 }
  0x1c   : > { %220 = vperm.xlu0 %434, %v216_v1   ;;  %v215_v4 = vld [vmem:[%s196_s30] sm:$0xff]  ;;  %vm242_vm2 = vcmp.ge.s32.totalorder %v216_v1, 0  ;;  %vm243_vm3 = vcmp.lt.s32.totalorder %v216_v1, 16  ;;  %p438_p12 = scmp.ne.s32.totalorder %s605_s8, %s437_s24  ;;  %p444_p1 = scmp.lt.s32.totalorder %s605_s8, %s442_s25 }
  0x1d   : > { %vm244_vm4 = vmand %vm242_vm2, %vm243_vm3  ;;  %p445_p2 = scmp.lt.s32.totalorder %s443_s26, %s437_s24 }
  0x1e   : > { %vm246_vm6 = vmand %vm245_vm5, %vm244_vm4  ;;  %p439_p13 = pnand %p438_p12, %p574_p4 }
  0x1f   : > { %p446_p3 = por %p445_p2, %p444_p1 }
  0x20   : > { %p440_p0 = pneg %p439_p13 }
  0x22   : > { %p447_p5 = pnand %p446_p3, %p440_p0 }
  0x9b   : > { %v221_v5 = vpop.permute.xlu0 %220 }
  0x9c   : > { %vm222_vm1 = vcmp.eq.s32.totalorder %v218_v3, %v221_v5 }
  0x9d   : > { %v223_v6 = vsel %vm222_vm1, %v215_v4, 0.0 }
  0x9e   : > { %v225_v7 = vsel %vm224_vm0, %v223_v6, 0.0 }
  0x9f   : > { %226 = vadd.xlane.f32.xlu0 %v225_v7 }
 0x12c   : > { %v227_v8 = vpop.xlane.xlu0 %226 }
 0x12d   : > { %v228_v9 = vmax.f32 %v227_v8, 1e-07 }
 0x12f   : > { %v229_v10 = vmin.f32 %v228_v9, 0.9999999 }
 0x131   : > { %435 = vlog2.f32 %v229_v10  ;;  %v230_v16 = vsub.f32 1.0, %v229_v10 }
 0x13b   : > { %v436_v14 = vpop.eup %435 }
 0x13c   : > { %v232_v15 = vmul.f32 0.6931472, %v436_v14 }
 0x13e   : > { %v233_v17 = vsub.f32 0.0, %v232_v15 }
 0x140   : > { %v234_v18 = vmul.f32 %v233_v17, %v230_v16 }
 0x142   : > { %v235_v19 = vmul.f32 %v234_v18, %v230_v16 }
 0x144   : > { %v247_v20 = vsel %vm246_vm6, %v235_v19, 0.0 }
 0x145   : > { %v250_v21 = vsel %vm249_vm7, %v247_v20, 0.0 }
 0x146   : > { %251 = vadd.xlane.f32.xlu1 %v250_v21 }
 0x1d3   : > { %v252_v22 = vpop.xlane.xlu1 %251 }
 0x1d4   : > { %v253_v23 = vrot.slane %v252_v22, 4 }
 0x1d6   : > { %v254_v24 = vadd.f32 %v253_v23, %v252_v22 }
 0x1d8   : > { %v255_v25 = vrot.slane %v254_v24, 2 }
 0x1da   : > { %v256_v26 = vadd.f32 %v255_v25, %v254_v24 }
 0x1dc   : > { %v257_v27 = vrot.slane %v256_v26, 1 }
 0x1de   : > { %v258_v28 = vadd.f32 %v257_v27, %v256_v26 }
 0x1e0   : > { %375 = vpush %v258_v28 }
 0x211   : > { %s376_s15 = spop %375 }
 0x212   : > { %v260_v29 = vstv %s376_s15 }
 0x213   : > { %262 = vst [vmem:[%s189_s7] sm:$0xff] %v260_v29 }
 0x214   : > { %450 = shalt.err (!%p447_p5)
}
 0x215   : > { %s451_s27 = scalar_lea.hbm %s603_s20, 128  ;;  %s455_s30 = scalar_lea.hbm %s652_s2, 256 }
 0x216   : > { %p452_p6 = scmp.ne.s32.totalorder %s603_s20, %s451_s27  ;;  %p456_p10 = scmp.lt.u32.totalorder %s603_s20, %s652_s2 }
 0x217   : > { %p457_p11 = scmp.lt.u32.totalorder %s455_s30, %s451_s27  ;;  %p459_p13 = scmp.lt.u32.totalorder %s451_s27, %s603_s20 }
 0x218   : > { %p453_p7 = pnand %p452_p6, %p574_p4 }
 0x219   : > { %p458_p12 = por %p457_p11, %p456_p10 }
 0x21a   : > { %p454_p9 = pneg %p453_p7 }
 0x21b   : > { %p460_p0 = por %p459_p13, %p458_p12 }
 0x21d   : > { %p461_p1 = pnand %p460_p0, %p454_p9 }
 0x21f   : > { %464 = shalt.err (!%p461_p1)
}
 0x220   : > { %377 = dma.vmem_to_hbm [thread:$0]  (%p574_p4), %s605_s8, 128, %s603_s20, %s264_s23  }
 0x221 PF: > { %p383_p2 = scmp.ge.s32.totalorder %s515_s14, 2  ;;  %s289_s5 = sand.u32 1, %s495_s9  }
 0x222   : > { %s290_s6 = scalar_lea.sflag [#allocation3], %s289_s5 }
 0x223   : > { %p380_p3 = pnand %p383_p2, %p581_p8 }
 0x225   : > { %490 = dma.done.wait (!%p380_p3), %s290_s6, 128  }
 0x226   : > { %492 = vsyncadd (!%p380_p3), %s290_s6, 4294967168  ;;  %s15_s14 = sadd.s32 1, %s515_s14   ;;  %s655_s9 = smov %s499_s10 }
 0x227   : > { %p12_p5 = scmp.ge.s32.totalorder %s15_s14, 4   ;;  %s656_s10 = smov %s503_s11 }
 0x228   : > { %s657_s11 = smov %s587_s22  ;;  %s658_s12 = smov %s511_s13 }
 0x229   : > { %s659_s13 = smov %s661_s17  ;;  %14 = sbr.rel (!%p12_p5) target bundleno = 4 (0x4), region = 70 }
 0x230   :  { %295 = vsyncpa [#allocation3], 1 }
 0x231   :  { %297 = vsyncpa [#allocation3 + $0x1], 1 }

</bundles_post_ra>
